<compile_context>
chip_gen: v5e
topology: v5e:2x2
jax: 0.10.0
libtpu: 0.0.40
codegen_flags: <defaults>
</compile_context>

<pallas_src>
import functools

import jax
import jax.numpy as jnp
from jax.experimental import pallas as pl
from jax.experimental.pallas import tpu as pltpu


# ---------------------------------------------------------------------------
# Kernels
# ---------------------------------------------------------------------------

def _scale_linear_resident_kernel(x_ref, w_ref, b_ref, o_ref, *, scale):
    """Resident-W path: one (tm, H) output tile = (x_tile @ W + b) * scale.

    W / b block indices are constant across the grid, so they are DMA'd once
    and stay in VMEM; K is not tiled, so a single MXU dot finishes the tile.
    """
    acc = jnp.dot(x_ref[...], w_ref[...], preferred_element_type=jnp.float32)
    o_ref[...] = ((acc + b_ref[...]) * scale).astype(o_ref.dtype)


def _scale_linear_tiled_kernel(x_ref, w_ref, b_ref, o_ref, *, scale):
    """Tiled (M, N, K) path, K innermost.

    The output block index is k-invariant, so the f32 output ref itself is the
    resident accumulator (no extra VMEM scratch).  NOTE: W's block index
    changes with (k, j), so W is re-streamed from HBM once per row tile i;
    large tm amortizes that traffic (there is no implicit W residency here).
    """
    k = pl.program_id(2)

    @pl.when(k == 0)
    def _init():
        o_ref[...] = jnp.zeros_like(o_ref)

    o_ref[...] += jnp.dot(x_ref[...], w_ref[...],
                          preferred_element_type=jnp.float32)

    @pl.when(k == pl.num_programs(2) - 1)
    def _finalize():
        o_ref[...] = (o_ref[...] + b_ref[...]) * scale


# ---------------------------------------------------------------------------
# Wrapper
# ---------------------------------------------------------------------------

def _round_up(x, m):
    return (x + m - 1) // m * m


def _largest_tile(dim, max_tile, mult):
    """Largest multiple of `mult` that is <= max_tile and divides `dim`."""
    t = (min(max_tile, dim) // mult) * mult
    while t > mult and dim % t != 0:
        t -= mult
    return max(t, mult)


def _vmem_budget_bytes():
    """Per-generation VMEM budget (leave ~half of physical VMEM as headroom)."""
    try:
        cap = pltpu.get_tpu_info().vmem_capacity_bytes
    except Exception:
        cap = 64 * 1024 * 1024  # conservative: v7x per-TensorCore capacity
    return min(cap // 2, 64 * 1024 * 1024)


def scale_linear(x, w, b, scale, *,
                 tm_max=512, tn_max=1024, tk_max=1024,
                 compute_dtype=jnp.bfloat16, allow_resident=True):
    """Computes fn(x) * scale with fn = Linear(w, b), fused in one Pallas kernel.

    x: (B, S, H)    w: (H, H)    b: (H,)    scale: python float (baked in).
    Inputs are cast to `compute_dtype` (bf16 by default); accumulation, bias
    add and the scale multiply are done in f32; output dtype matches x.
    """
    B, S, H = x.shape
    M = B * S
    out_dtype = x.dtype

    x2d = x.reshape(M, H).astype(compute_dtype)
    wc = w.astype(compute_dtype)
    b2d = b.reshape(1, H).astype(jnp.float32)

    itemsize = jnp.dtype(compute_dtype).itemsize
    vmem_budget = _vmem_budget_bytes()

    # Rows: bf16 sublane packing prefers multiples of 16 (8 for f32).  The
    # ragged last M block is handled by Pallas (OOB rows are never stored and
    # never contaminate valid rows; K is always exact).
    row_mult = 16 if itemsize < 4 else 8
    tm = min(tm_max, _round_up(M, row_mult))

    # ---- Path A: whole W panel genuinely VMEM-resident (grid over M only). --
    resident_bytes = (2 * (tm * H * itemsize          # x tile (double-buffered)
                           + H * H * itemsize         # W panel
                           + tm * H * 4)              # f32 output tile
                      + 2 * H * 4)                    # bias
    if allow_resident and resident_bytes <= vmem_budget:
        cost = pl.CostEstimate(
            flops=2 * M * H * H,
            transcendentals=0,
            bytes_accessed=(M * H * itemsize + H * H * itemsize
                            + H * 4 + M * H * 4),
        )
        out = pl.pallas_call(
            functools.partial(_scale_linear_resident_kernel, scale=scale),
            out_shape=jax.ShapeDtypeStruct((M, H), jnp.float32),
            grid=(pl.cdiv(M, tm),),
            in_specs=[
                pl.BlockSpec((tm, H), lambda i: (i, 0)),
                # Constant block index -> DMA'd once, stays resident in VMEM.
                pl.BlockSpec((H, H), lambda i: (0, 0)),
                pl.BlockSpec((1, H), lambda i: (0, 0)),
            ],
            out_specs=pl.BlockSpec((tm, H), lambda i: (i, 0)),
            compiler_params=pltpu.CompilerParams(
                dimension_semantics=("parallel",),
                vmem_limit_bytes=vmem_budget,
            ),
            cost_estimate=cost,
        )(x2d, wc, b2d)
        return out.astype(out_dtype).reshape(B, S, H)

    # ---- Path B: tiled (M, N, K) reduction grid. ---------------------------
    if H % 128 == 0:
        # Production path: no padding, K/N tiles are exact divisors of H.
        n_pad = k_pad = H
        x_p, w_p, b_p = x2d, wc, b2d
    else:
        # Rare fallback: large hidden not a multiple of 128 -> zero-pad K/N
        # (zeros are exact for the matmul; padded N columns are sliced off).
        k_pad = _round_up(H, 128)
        n_pad = _round_up(H, 128)
        x_p = jnp.pad(x2d, ((0, 0), (0, k_pad - H)))
        w_p = jnp.pad(wc, ((0, k_pad - H), (0, n_pad - H)))
        b_p = jnp.pad(b2d, ((0, 0), (0, n_pad - H)))

    tn = _largest_tile(n_pad, tn_max, 128)
    tk = _largest_tile(k_pad, tk_max, 128)

    def _footprint(tn_, tk_):
        return (2 * (tm * tk_ * itemsize + tk_ * tn_ * itemsize + tm * tn_ * 4)
                + 2 * tn_ * 4)

    # Shrink K/N tiles if the double-buffered footprint exceeds the VMEM budget.
    while _footprint(tn, tk) > vmem_budget and max(tn, tk) > 128:
        if tk >= tn and tk > 128:
            tk = _largest_tile(k_pad, tk // 2, 128)
        elif tn > 128:
            tn = _largest_tile(n_pad, tn // 2, 128)
        else:
            break

    grid = (pl.cdiv(M, tm), n_pad // tn, k_pad // tk)
    m_tiles, n_tiles = grid[0], grid[1]

    cost = pl.CostEstimate(
        flops=2 * M * k_pad * n_pad,
        transcendentals=0,
        # Honest HBM traffic: x is re-read once per N tile, W once per M tile.
        bytes_accessed=(M * k_pad * itemsize * n_tiles
                        + k_pad * n_pad * itemsize * m_tiles
                        + n_pad * 4 + M * n_pad * 4),
    )

    out = pl.pallas_call(
        functools.partial(_scale_linear_tiled_kernel, scale=scale),
        out_shape=jax.ShapeDtypeStruct((M, n_pad), jnp.float32),
        grid=grid,
        in_specs=[
            pl.BlockSpec((tm, tk), lambda i, j, k: (i, k)),
            pl.BlockSpec((tk, tn), lambda i, j, k: (k, j)),
            pl.BlockSpec((1, tn), lambda i, j, k: (0, j)),
        ],
        # k-invariant output block index -> f32 accumulator tile.
        out_specs=pl.BlockSpec((tm, tn), lambda i, j, k: (i, j)),
        compiler_params=pltpu.CompilerParams(
            dimension_semantics=("parallel", "parallel", "arbitrary"),
            vmem_limit_bytes=vmem_budget,
        ),
        cost_estimate=cost,
    )(x_p, w_p, b_p)

    if n_pad != H:
        out = out[:, :H]
    return out.astype(out_dtype).reshape(B, S, H)


# ---------------------------------------------------------------------------
# Self-test
# ---------------------------------------------------------------------------

if __name__ == "__main__":
    key = jax.random.PRNGKey(0)
    k_x, k_w, k_b = jax.random.split(key, 3)

    # Scale(scale=0.5, fn=Linear(hidden, hidden))
    batch, seq, hidden = 2, 8, 32
    scale = 0.5

    x = jax.random.normal(k_x, (batch, seq, hidden), dtype=jnp.float32)
    w = jax.random.normal(k_w, (hidden, hidden), dtype=jnp.float32) * 0.02
    b = jax.random.normal(k_b, (hidden,), dtype=jnp.float32) * 0.02

    # Path A (resident-W) at the small module shape.
    out = jax.block_until_ready(scale_linear(x, w, b, scale))

    # Reference with the same bf16 input rounding + f32 accumulate.
    xb = x.astype(jnp.bfloat16).astype(jnp.float32)
    wb = w.astype(jnp.bfloat16).astype(jnp.float32)
    ref = (jnp.einsum("bsh,hk->bsk", xb, wb,
                      precision=jax.lax.Precision.HIGHEST) + b) * scale
    assert out.shape == (batch, seq, hidden)
    assert out.dtype == x.dtype
    assert jnp.allclose(out, ref, atol=1e-4, rtol=1e-4), \
        float(jnp.max(jnp.abs(out - ref)))

    # Path B (tiled M/N/K grid) exercised at a still-small shape.
    batch2, seq2, hidden2 = 2, 64, 128
    x2 = jax.random.normal(k_x, (batch2, seq2, hidden2), dtype=jnp.float32)
    w2 = jax.random.normal(k_w, (hidden2, hidden2), dtype=jnp.float32) * 0.02
    b2 = jax.random.normal(k_b, (hidden2,), dtype=jnp.float32) * 0.02
    out2 = jax.block_until_ready(
        scale_linear(x2, w2, b2, scale,
                     tm_max=64, tn_max=128, tk_max=128, allow_resident=False))
    xb2 = x2.astype(jnp.bfloat16).astype(jnp.float32)
    wb2 = w2.astype(jnp.bfloat16).astype(jnp.float32)
    ref2 = (jnp.einsum("bsh,hk->bsk", xb2, wb2,
                       precision=jax.lax.Precision.HIGHEST) + b2) * scale
    assert out2.shape == (batch2, seq2, hidden2)
    assert jnp.allclose(out2, ref2, atol=1e-4, rtol=1e-4), \
        float(jnp.max(jnp.abs(out2 - ref2)))

    print("KERNEL_OK")
</pallas_src>

<mosaic_0001>
module attributes {stable_mosaic.version = 11 : i64} {
  func.func @_scale_linear_resident_kernel(%arg0: i32, %arg1: memref<16x32xbf16, #tpu.memory_space<vmem>>, %arg2: memref<32x32xbf16, #tpu.memory_space<vmem>>, %arg3: memref<1x32xf32, #tpu.memory_space<vmem>>, %arg4: memref<16x32xf32, #tpu.memory_space<vmem>>) attributes {dimension_semantics = [#tpu.dimension_semantics<parallel>], iteration_bounds = array<i64: 1>, scalar_prefetch = 0 : i64, scratch_operands = 0 : i64, tpu.core_type = #tpu.core_type<tc>, window_params = [{transform_indices = @transform_0, window_bounds = array<i64: 16, 32>}, {pipeline_mode = #tpu.pipeline_mode<synchronous>, transform_indices = @transform_1, window_bounds = array<i64: 32, 32>}, {pipeline_mode = #tpu.pipeline_mode<synchronous>, transform_indices = @transform_2, window_bounds = array<i64: 1, 32>}, {transform_indices = @transform_3, window_bounds = array<i64: 16, 32>}]} {
    %c0 = arith.constant 0 : index
    %c0_0 = arith.constant 0 : index
    %0 = vector.load %arg1[%c0, %c0_0] : memref<16x32xbf16, #tpu.memory_space<vmem>>, vector<16x32xbf16>
    %c0_1 = arith.constant 0 : index
    %c0_2 = arith.constant 0 : index
    %1 = vector.load %arg2[%c0_1, %c0_2] : memref<32x32xbf16, #tpu.memory_space<vmem>>, vector<32x32xbf16>
    %cst = arith.constant dense<0.000000e+00> : vector<16x32xf32>
    %2 = tpu.matmul %0, %1, %cst {dimension_numbers = #tpu.dot_dimension_numbers<[1], [0], [0], [1], [0, 0, 1, 1], [], []>} : vector<16x32xbf16>, vector<32x32xbf16>, vector<16x32xf32> -> vector<16x32xf32>
    %c0_3 = arith.constant 0 : index
    %c0_4 = arith.constant 0 : index
    %3 = vector.load %arg3[%c0_3, %c0_4] : memref<1x32xf32, #tpu.memory_space<vmem>>, vector<1x32xf32>
    %4 = vector.broadcast %3 : vector<1x32xf32> to vector<16x32xf32>
    %5 = arith.addf %2, %4 : vector<16x32xf32>
    %cst_5 = arith.constant 5.000000e-01 : f32
    %6 = vector.broadcast %cst_5 : f32 to vector<16x32xf32>
    %7 = arith.mulf %5, %6 : vector<16x32xf32>
    %c0_6 = arith.constant 0 : index
    %c0_7 = arith.constant 0 : index
    %8 = vector.load %arg4[%c0_6, %c0_7] : memref<16x32xf32, #tpu.memory_space<vmem>>, vector<16x32xf32>
    tpu.vector_store %arg4[%c0_6, %c0_7], %7 {strides = array<i32>} : memref<16x32xf32, #tpu.memory_space<vmem>>, vector<16x32xf32>,
    return
  }
  func.func @transform_0(%arg0: i32) -> (i32, i32) {
    %c0_i32 = arith.constant 0 : i32
    %c0_i32_0 = arith.constant 0 : i32
    return %arg0, %c0_i32 : i32, i32
  }
  func.func @transform_1(%arg0: i32) -> (i32, i32) {
    %c0_i32 = arith.constant 0 : i32
    %c0_i32_0 = arith.constant 0 : i32
    %c0_i32_1 = arith.constant 0 : i32
    return %c0_i32, %c0_i32_0 : i32, i32
  }
  func.func @transform_2(%arg0: i32) -> (i32, i32) {
    %c0_i32 = arith.constant 0 : i32
    %c0_i32_0 = arith.constant 0 : i32
    %c0_i32_1 = arith.constant 0 : i32
    return %c0_i32, %c0_i32_0 : i32, i32
  }
  func.func @transform_3(%arg0: i32) -> (i32, i32) {
    %c0_i32 = arith.constant 0 : i32
    %c0_i32_0 = arith.constant 0 : i32
    return %arg0, %c0_i32 : i32, i32
  }
}

</mosaic_0001>

<bundles_post_ra>
// kernel: tpu_custom_call.1
= control target key start
LH: loop header
LB: loop body
LE: loop exit
PB: predicated region body
PF: predicated region fallthrough
CT: control target
= control target key end

     0   :  { %8 = vsyncpa [#allocation3], 0  ;;  %s258_s0 = inlined_call_operand.hbm [shape: bf16[16,32], index: 0, kind: input, shape index: {}]   ;;  %s259_s1 = inlined_call_operand.hbm [shape: bf16[32,32], index: 1, kind: input, shape index: {}]   ;;  %s260_s2 = inlined_call_operand.vmem [shape: f32[1,32], index: 2, kind: input, shape index: {}]   ;;  %s261_s3 = inlined_call_operand.hbm [shape: f32[16,32], index: 3, kind: output, shape index: {}]  }
   0x1   :  { %9 = vsyncpa [#allocation6], 0 }
   0x2   :  { %10 = vsyncpa [#allocation4], 0  ;;  %s15_s14 = sshll.u32 %s258_s0, 4  ;;  %s219_s15 = smov [#allocation2]   ;;  %s16_s14 = int_to_ptr.hbm [resolvable:$true] %s15_s14 }
   0x3   :  { %s17_s16 = sshll.u32 %s219_s15, 4  ;;  %s28_s19 = sshll.u32 %s259_s1, 4  ;;  %s18_s16 = int_to_ptr.vmem [resolvable:$true] %s17_s16  ;;  %s29_s19 = int_to_ptr.hbm [resolvable:$true] %s28_s19 }
   0x4   :  { %s220_s20 = smov 64   ;;  %s221_s21 = smov 4  }
   0x5   :  { %23 = dma.hbm_to_vmem [thread:$0]  %s16_s14, 128, %s18_s16, [#allocation3], %s220_s20, %s220_s20, %s221_s21  }
   0x6   :  { %s222_s22 = smov [#allocation5]  }
   0x7   :  { %s30_s23 = sshll.u32 %s222_s22, 4  ;;  %s31_s23 = int_to_ptr.vmem [resolvable:$true] %s30_s23 }
   0x8   :  { %36 = dma.hbm_to_vmem [thread:$0]  %s29_s19, 256, %s31_s23, [#allocation6], %s220_s20, %s220_s20, %s221_s21  }
   0x9   :  { %213 = dma.done.wait [#allocation3], 128  }
   0xa   :  { %214 = vsyncadd [#allocation3], 4294967168 }
   0xb   :  { %215 = dma.done.wait [#allocation6], 256  }
   0xc   :  { %216 = vsyncadd [#allocation6], 4294967040  ;;  %v132_v0 = vld [vmem:[#allocation5 + $0x8] sm:$0xff]  ;;  %v131_v1 = vld [vmem:[#allocation5] sm:$0xff]  ;;  %vm75_vm0 = vcmask 261120   ;;  %s223_s24 = smov [#allocation7]  }
   0xd   :  { %85 = vmatpush.bf16.msra.mxu0 %v132_v0  ;;  %v130_v2 = vld [vmem:[#allocation2] sm:$0xff]  ;;  %s101_s25 = sshll.u32 %s223_s24, 4  ;;  %s103_s28 = sshll.u32 %s261_s3, 4  ;;  %s102_s25 = int_to_ptr.vmem [resolvable:$true] %s101_s25  ;;  %s104_s28 = int_to_ptr.hbm [resolvable:$true] %s103_s28 }
   0xe   :  { %v140_v3 = vld [vmem:[%s260_s2] ss:$0 sm:$0xff]  ;;  %s224_s29 = smov 128   ;;  %s225_s30 = smov 8  }
  0x11   :  { %86 = vmatpush.bf16.msra.mxu0 %v131_v1 }
  0x14   :  { %129 = vmatmul.msk.bf16.vlgmr.msra.gmra.mxu0 %vm75_vm0, %v130_v2 }
  0x91   :  { %v88_v4 = vpop.f32.mrf.mxu0 }
  0x92   :  { %v89_v5 = vadd.f32 %v140_v3, %v88_v4 }
  0x94   :  { %v93_v6 = vmul.f32 0.5, %v89_v5 }
  0x96   :  { %95 = vst.msk [vmem:[#allocation7] sm:$0xff] %vm75_vm0, %v93_v6 }
  0x99   :  { %v90_v7 = vpop.f32.mrf.mxu0 }
  0x9a   :  { %v91_v8 = vadd.f32 %v140_v3, %v90_v7 }
  0x9c   :  { %v94_v9 = vmul.f32 0.5, %v91_v8 }
  0x9e   :  { %96 = vst.msk [vmem:[#allocation7 + $0x8] sm:$0xff] %vm75_vm0, %v94_v9 }
  0x9f   :  { %109 = dma.vmem_to_hbm [thread:$0]  %s102_s25, 256, %s104_s28, [#allocation4], %s224_s29, %s224_s29, %s225_s30  }
  0xa0   :  { %217 = dma.done.wait [#allocation4], 256  }
  0xa1   :  { %218 = vsyncadd [#allocation4], 4294967040 }
  0xa2   :  { %114 = vsyncpa [#allocation3], 1 }
  0xa3   :  { %115 = vsyncpa [#allocation6], 1 }
  0xa4   :  { %116 = vsyncpa [#allocation4], 1 }

</bundles_post_ra>
